<compile_context>
chip_gen: v7x
topology: tpu7x:2x2x1
jax: 0.10.0
libtpu: 0.0.40
codegen_flags: <defaults>
</compile_context>

<pallas_src>
import functools

import jax
import jax.numpy as jnp
from jax.experimental import pallas as pl
from jax.experimental.pallas import tpu as pltpu


def _round_up(x, m):
    return ((x + m - 1) // m) * m


def rnn_kernel(x_ref, w_ih_ref, w_hh_ref, b_ref, w_fc_ref, b_fc_ref, out_ref, xp_ref,
               *, T, unroll):
    """One batch shard: hoisted input projection + serial recurrence + fc head.

    x_ref:    (T*B, I)      bf16, time-major, batch-flattened (rows t*B:(t+1)*B == step t)
    w_ih_ref: (I, H_pad)    bf16, pre-transposed
    w_hh_ref: (H_pad, H_pad) bf16, pre-transposed
    b_ref:    (1, H_pad)    f32, fused b_ih + b_hh
    w_fc_ref: (H_pad, O_pad) bf16, pre-transposed
    b_fc_ref: (1, O_pad)    f32
    out_ref:  (B, O_pad)    f32
    xp_ref:   (T*B, H_pad)  f32 VMEM scratch (staged input projection)
    """
    TB, _ = x_ref.shape
    B = TB // T
    H = w_hh_ref.shape[0]

    # (1) Hoist the input projection + fused bias out of the serial loop:
    #     one well-shaped bf16 matmul (f32 accumulate), staged once in VMEM scratch.
    xp_ref[...] = (
        jnp.dot(x_ref[...], w_ih_ref[...], preferred_element_type=jnp.float32)
        + b_ref[...])

    w_hh = w_hh_ref[...]                                   # (H_pad, H_pad) bf16, resident

    # (2) Serial recurrence; h carried as an f32 value (vregs). fori_loop bounds live
    #     ranges; unroll keeps enough scheduling visibility to interleave EUP/VPU/MXU
    #     work of adjacent steps.
    def step(t, h):
        row = pl.multiple_of(t * B, 8)
        xp_t = xp_ref[pl.ds(row, B), :]
        hw = jnp.dot(h.astype(w_hh.dtype), w_hh, preferred_element_type=jnp.float32)
        return jnp.tanh(xp_t + hw)

    h = jax.lax.fori_loop(0, T, step, jnp.zeros((B, H), jnp.float32), unroll=unroll)

    # (3) Linear head on the last hidden state (lane-dense output store).
    out_ref[...] = (
        jnp.dot(h.astype(w_fc_ref.dtype), w_fc_ref[...],
                preferred_element_type=jnp.float32)
        + b_fc_ref[...])


def simple_rnn_forward(x, params, *, batch_shards=None):
    """x: (B, T, I) batch-first, like the PyTorch module. Returns (B, O) float32."""
    w_ih, w_hh, b_ih, b_hh, w_fc, b_fc = params
    B, T, I = x.shape
    H = w_ih.shape[0]
    O = w_fc.shape[0]

    # Lane/sublane-friendly padding: H and O -> multiple of 128 lanes (lane-dense
    # matmuls & stores), batch -> multiple of 16 (bf16 sublane packing).
    H_pad = _round_up(max(H, 128), 128)
    O_pad = _round_up(max(O, 128), 128)
    B_pad = _round_up(max(B, 16), 16)

    # v7x: shard the (independent) batch rows across the 2 TensorCores when each
    # shard still keeps >= 16 rows.  Elsewhere this is a cheap serial grid loop.
    if batch_shards is None:
        batch_shards = 2 if B_pad >= 32 else 1
    B_pad = _round_up(B_pad, 16 * batch_shards)
    B_shard = B_pad // batch_shards
    TBs = T * B_shard

    # Wrapper-side layout plumbing (done once): pad, shard, time-major, bf16 operands,
    # fused biases, pre-transposed weights.
    x_p = jnp.pad(x.astype(jnp.float32), ((0, B_pad - B), (0, 0), (0, 0)))   # (B_pad,T,I)
    x_sh = (x_p.reshape(batch_shards, B_shard, T, I)
                .transpose(0, 2, 1, 3)
                .reshape(batch_shards, TBs, I)
                .astype(jnp.bfloat16))                                        # (S,T*Bs,I)

    w_ih_t = jnp.pad(w_ih.T.astype(jnp.float32),
                     ((0, 0), (0, H_pad - H))).astype(jnp.bfloat16)           # (I, H_pad)
    w_hh_t = jnp.pad(w_hh.T.astype(jnp.float32),
                     ((0, H_pad - H), (0, H_pad - H))).astype(jnp.bfloat16)   # (H_pad,H_pad)
    b_2d = jnp.pad((b_ih + b_hh).astype(jnp.float32),
                   (0, H_pad - H)).reshape(1, H_pad)                          # fused bias
    w_fc_t = jnp.pad(w_fc.T.astype(jnp.float32),
                     ((0, H_pad - H), (0, O_pad - O))).astype(jnp.bfloat16)   # (H_pad,O_pad)
    b_fc_2d = jnp.pad(b_fc.astype(jnp.float32), (0, O_pad - O)).reshape(1, O_pad)

    # Per-shard resident VMEM footprint; cap the scoped limit at 64 MiB so the sizing
    # also holds on v7x (half of v5e/v6e physical VMEM).  Beyond that, switch to the
    # streamed T-chunk variant (see TODO at top).
    resident = (2 * TBs * I + 4 * TBs * H_pad
                + 2 * (I * H_pad + H_pad * H_pad + H_pad * O_pad)
                + 4 * (H_pad + O_pad) + 4 * B_shard * O_pad)
    vmem_limit = int(min(64 * 1024 * 1024,
                         max(16 * 1024 * 1024, 2 * resident + (2 << 20))))

    flops = (2 * T * B_pad * I * H_pad + 2 * T * B_pad * H_pad * H_pad
             + 2 * B_pad * H_pad * O_pad)
    bytes_accessed = (2 * x_sh.size + 2 * w_ih_t.size + 2 * w_hh_t.size
                      + 2 * w_fc_t.size + 4 * b_2d.size + 4 * b_fc_2d.size
                      + 4 * B_pad * O_pad)

    grid_spec = pltpu.PrefetchScalarGridSpec(
        num_scalar_prefetch=0,
        grid=(batch_shards,),
        in_specs=[
            pl.BlockSpec((None, TBs, I), lambda s: (s, 0, 0)),        # x, per shard
            pl.BlockSpec((I, H_pad), lambda s: (0, 0)),               # W_ih (resident)
            pl.BlockSpec((H_pad, H_pad), lambda s: (0, 0)),           # W_hh (resident)
            pl.BlockSpec((1, H_pad), lambda s: (0, 0)),               # fused RNN bias
            pl.BlockSpec((H_pad, O_pad), lambda s: (0, 0)),           # W_fc (resident)
            pl.BlockSpec((1, O_pad), lambda s: (0, 0)),               # fc bias
        ],
        out_specs=pl.BlockSpec((B_shard, O_pad), lambda s: (s, 0)),
        scratch_shapes=[pltpu.VMEM((TBs, H_pad), jnp.float32)],       # staged xp
    )

    out_p = pl.pallas_call(
        functools.partial(rnn_kernel, T=T, unroll=min(T, 8)),
        out_shape=jax.ShapeDtypeStruct((B_pad, O_pad), jnp.float32),
        grid_spec=grid_spec,
        compiler_params=pltpu.CompilerParams(
            dimension_semantics=("parallel",),
            vmem_limit_bytes=vmem_limit,
        ),
        cost_estimate=pl.CostEstimate(
            flops=flops,
            transcendentals=T * B_pad * H_pad,
            bytes_accessed=bytes_accessed,
        ),
    )(x_sh, w_ih_t, w_hh_t, b_2d, w_fc_t, b_fc_2d)

    return out_p[:B, :O]


def init_params(key, input_size, hidden_size, output_size):
    """Deterministic init mimicking PyTorch's U(-1/sqrt(H), 1/sqrt(H)) scheme."""
    ks = jax.random.split(key, 6)
    bound = 1.0 / jnp.sqrt(hidden_size)
    w_ih = jax.random.uniform(ks[0], (hidden_size, input_size), jnp.float32, -bound, bound)
    w_hh = jax.random.uniform(ks[1], (hidden_size, hidden_size), jnp.float32, -bound, bound)
    b_ih = jax.random.uniform(ks[2], (hidden_size,), jnp.float32, -bound, bound)
    b_hh = jax.random.uniform(ks[3], (hidden_size,), jnp.float32, -bound, bound)
    w_fc = jax.random.uniform(ks[4], (output_size, hidden_size), jnp.float32, -bound, bound)
    b_fc = jax.random.uniform(ks[5], (output_size,), jnp.float32, -bound, bound)
    return (w_ih, w_hh, b_ih, b_hh, w_fc, b_fc)


def reference_forward(x, params):
    """Pure-JAX f32 reference matching the PyTorch module semantics."""
    w_ih, w_hh, b_ih, b_hh, w_fc, b_fc = params
    B = x.shape[0]
    H = w_ih.shape[0]
    h = jnp.zeros((B, H), jnp.float32)
    for t in range(x.shape[1]):
        h = jnp.tanh(x[:, t, :] @ w_ih.T + b_ih + h @ w_hh.T + b_hh)
    return h @ w_fc.T + b_fc


if __name__ == "__main__":
    B, T, I, H, O = 2, 8, 16, 32, 8

    key = jax.random.PRNGKey(0)
    k_x, k_p = jax.random.split(key)
    x = jax.random.normal(k_x, (B, T, I), jnp.float32)
    params = init_params(k_p, I, H, O)

    ref = reference_forward(x, params)

    # Default path (single shard at this toy batch).
    out = jax.block_until_ready(simple_rnn_forward(x, params))
    assert out.shape == (B, O)
    # bf16 matmul operands (f32 accumulation) -> loosened tolerance vs f32 reference.
    assert jnp.allclose(out, ref, atol=3e-2, rtol=3e-2), (out, ref)

    # Exercise the multi-TensorCore (grid over batch shards) path as well.
    out_sh = jax.block_until_ready(simple_rnn_forward(x, params, batch_shards=2))
    assert out_sh.shape == (B, O)
    assert jnp.allclose(out_sh, ref, atol=3e-2, rtol=3e-2), (out_sh, ref)

    print("KERNEL_OK")
</pallas_src>

<mosaic_0001>
module attributes {stable_mosaic.version = 11 : i64} {
  func.func @rnn_kernel(%arg0: i32, %arg1: memref<1x128x16xbf16, #tpu.memory_space<vmem>>, %arg2: memref<16x128xbf16, #tpu.memory_space<vmem>>, %arg3: memref<128x128xbf16, #tpu.memory_space<vmem>>, %arg4: memref<1x128xf32, #tpu.memory_space<vmem>>, %arg5: memref<128x128xbf16, #tpu.memory_space<vmem>>, %arg6: memref<1x128xf32, #tpu.memory_space<vmem>>, %arg7: memref<16x128xf32, #tpu.memory_space<vmem>>, %arg8: memref<128x128xf32, #tpu.memory_space<vmem>>) attributes {dimension_semantics = [#tpu.dimension_semantics<parallel>], iteration_bounds = array<i64: 1>, scalar_prefetch = 0 : i64, scratch_operands = 1 : i64, tpu.core_type = #tpu.core_type<tc>, window_params = [{transform_indices = @transform_0, window_bounds = array<i64: 1, 128, 16>}, {pipeline_mode = #tpu.pipeline_mode<synchronous>, transform_indices = @transform_1, window_bounds = array<i64: 16, 128>}, {pipeline_mode = #tpu.pipeline_mode<synchronous>, transform_indices = @transform_2, window_bounds = array<i64: 128, 128>}, {pipeline_mode = #tpu.pipeline_mode<synchronous>, transform_indices = @transform_3, window_bounds = array<i64: 1, 128>}, {pipeline_mode = #tpu.pipeline_mode<synchronous>, transform_indices = @transform_4, window_bounds = array<i64: 128, 128>}, {pipeline_mode = #tpu.pipeline_mode<synchronous>, transform_indices = @transform_5, window_bounds = array<i64: 1, 128>}, {transform_indices = @transform_6, window_bounds = array<i64: 16, 128>}]} {
    %c0 = arith.constant 0 : index
    %c0_0 = arith.constant 0 : index
    %c0_1 = arith.constant 0 : index
    %0 = vector.load %arg1[%c0, %c0_0, %c0_1] : memref<1x128x16xbf16, #tpu.memory_space<vmem>>, vector<1x128x16xbf16>
    %1 = vector.shape_cast %0 : vector<1x128x16xbf16> to vector<128x16xbf16>
    %c0_2 = arith.constant 0 : index
    %c0_3 = arith.constant 0 : index
    %2 = vector.load %arg2[%c0_2, %c0_3] : memref<16x128xbf16, #tpu.memory_space<vmem>>, vector<16x128xbf16>
    %cst = arith.constant dense<0.000000e+00> : vector<128x128xf32>
    %3 = tpu.matmul %1, %2, %cst {dimension_numbers = #tpu.dot_dimension_numbers<[1], [0], [0], [1], [0, 0, 1, 1], [], []>} : vector<128x16xbf16>, vector<16x128xbf16>, vector<128x128xf32> -> vector<128x128xf32>
    %c0_4 = arith.constant 0 : index
    %c0_5 = arith.constant 0 : index
    %4 = vector.load %arg4[%c0_4, %c0_5] : memref<1x128xf32, #tpu.memory_space<vmem>>, vector<1x128xf32>
    %5 = vector.broadcast %4 : vector<1x128xf32> to vector<128x128xf32>
    %6 = arith.addf %3, %5 : vector<128x128xf32>
    %c0_6 = arith.constant 0 : index
    %c0_7 = arith.constant 0 : index
    %7 = vector.load %arg8[%c0_6, %c0_7] : memref<128x128xf32, #tpu.memory_space<vmem>>, vector<128x128xf32>
    tpu.vector_store %arg8[%c0_6, %c0_7], %6 {strides = array<i32>} : memref<128x128xf32, #tpu.memory_space<vmem>>, vector<128x128xf32>,
    %c0_8 = arith.constant 0 : index
    %c0_9 = arith.constant 0 : index
    %8 = vector.load %arg3[%c0_8, %c0_9] : memref<128x128xbf16, #tpu.memory_space<vmem>>, vector<128x128xbf16>
    %cst_10 = arith.constant 0.000000e+00 : f32
    %9 = vector.broadcast %cst_10 : f32 to vector<16x128xf32>
    %c0_i32 = arith.constant 0 : i32
    %c16_i32 = arith.constant 16 : i32
    %10 = arith.muli %c0_i32, %c16_i32 : i32
    %11 = tpu.assume_multiple %10, 8 : i32
    %12 = arith.index_cast %11 : i32 to index
    %c0_11 = arith.constant 0 : index
    %13 = vector.load %arg8[%12, %c0_11] : memref<128x128xf32, #tpu.memory_space<vmem>>, vector<16x128xf32>
    %14 = arith.truncf %9 : vector<16x128xf32> to vector<16x128xbf16>
    %cst_12 = arith.constant dense<0.000000e+00> : vector<16x128xf32>
    %15 = tpu.matmul %14, %8, %cst_12 {dimension_numbers = #tpu.dot_dimension_numbers<[1], [0], [0], [1], [0, 0, 1, 1], [], []>} : vector<16x128xbf16>, vector<128x128xbf16>, vector<16x128xf32> -> vector<16x128xf32>
    %16 = arith.addf %13, %15 : vector<16x128xf32>
    %17 = math.tanh %16 : vector<16x128xf32>
    %c1_i32 = arith.constant 1 : i32
    %c16_i32_13 = arith.constant 16 : i32
    %18 = arith.muli %c1_i32, %c16_i32_13 : i32
    %19 = tpu.assume_multiple %18, 8 : i32
    %20 = arith.index_cast %19 : i32 to index
    %c0_14 = arith.constant 0 : index
    %21 = vector.load %arg8[%20, %c0_14] : memref<128x128xf32, #tpu.memory_space<vmem>>, vector<16x128xf32>
    %22 = arith.truncf %17 : vector<16x128xf32> to vector<16x128xbf16>
    %cst_15 = arith.constant dense<0.000000e+00> : vector<16x128xf32>
    %23 = tpu.matmul %22, %8, %cst_15 {dimension_numbers = #tpu.dot_dimension_numbers<[1], [0], [0], [1], [0, 0, 1, 1], [], []>} : vector<16x128xbf16>, vector<128x128xbf16>, vector<16x128xf32> -> vector<16x128xf32>
    %24 = arith.addf %21, %23 : vector<16x128xf32>
    %25 = math.tanh %24 : vector<16x128xf32>
    %c2_i32 = arith.constant 2 : i32
    %c16_i32_16 = arith.constant 16 : i32
    %26 = arith.muli %c2_i32, %c16_i32_16 : i32
    %27 = tpu.assume_multiple %26, 8 : i32
    %28 = arith.index_cast %27 : i32 to index
    %c0_17 = arith.constant 0 : index
    %29 = vector.load %arg8[%28, %c0_17] : memref<128x128xf32, #tpu.memory_space<vmem>>, vector<16x128xf32>
    %30 = arith.truncf %25 : vector<16x128xf32> to vector<16x128xbf16>
    %cst_18 = arith.constant dense<0.000000e+00> : vector<16x128xf32>
    %31 = tpu.matmul %30, %8, %cst_18 {dimension_numbers = #tpu.dot_dimension_numbers<[1], [0], [0], [1], [0, 0, 1, 1], [], []>} : vector<16x128xbf16>, vector<128x128xbf16>, vector<16x128xf32> -> vector<16x128xf32>
    %32 = arith.addf %29, %31 : vector<16x128xf32>
    %33 = math.tanh %32 : vector<16x128xf32>
    %c3_i32 = arith.constant 3 : i32
    %c16_i32_19 = arith.constant 16 : i32
    %34 = arith.muli %c3_i32, %c16_i32_19 : i32
    %35 = tpu.assume_multiple %34, 8 : i32
    %36 = arith.index_cast %35 : i32 to index
    %c0_20 = arith.constant 0 : index
    %37 = vector.load %arg8[%36, %c0_20] : memref<128x128xf32, #tpu.memory_space<vmem>>, vector<16x128xf32>
    %38 = arith.truncf %33 : vector<16x128xf32> to vector<16x128xbf16>
    %cst_21 = arith.constant dense<0.000000e+00> : vector<16x128xf32>
    %39 = tpu.matmul %38, %8, %cst_21 {dimension_numbers = #tpu.dot_dimension_numbers<[1], [0], [0], [1], [0, 0, 1, 1], [], []>} : vector<16x128xbf16>, vector<128x128xbf16>, vector<16x128xf32> -> vector<16x128xf32>
    %40 = arith.addf %37, %39 : vector<16x128xf32>
    %41 = math.tanh %40 : vector<16x128xf32>
    %c4_i32 = arith.constant 4 : i32
    %c16_i32_22 = arith.constant 16 : i32
    %42 = arith.muli %c4_i32, %c16_i32_22 : i32
    %43 = tpu.assume_multiple %42, 8 : i32
    %44 = arith.index_cast %43 : i32 to index
    %c0_23 = arith.constant 0 : index
    %45 = vector.load %arg8[%44, %c0_23] : memref<128x128xf32, #tpu.memory_space<vmem>>, vector<16x128xf32>
    %46 = arith.truncf %41 : vector<16x128xf32> to vector<16x128xbf16>
    %cst_24 = arith.constant dense<0.000000e+00> : vector<16x128xf32>
    %47 = tpu.matmul %46, %8, %cst_24 {dimension_numbers = #tpu.dot_dimension_numbers<[1], [0], [0], [1], [0, 0, 1, 1], [], []>} : vector<16x128xbf16>, vector<128x128xbf16>, vector<16x128xf32> -> vector<16x128xf32>
    %48 = arith.addf %45, %47 : vector<16x128xf32>
    %49 = math.tanh %48 : vector<16x128xf32>
    %c5_i32 = arith.constant 5 : i32
    %c16_i32_25 = arith.constant 16 : i32
    %50 = arith.muli %c5_i32, %c16_i32_25 : i32
    %51 = tpu.assume_multiple %50, 8 : i32
    %52 = arith.index_cast %51 : i32 to index
    %c0_26 = arith.constant 0 : index
    %53 = vector.load %arg8[%52, %c0_26] : memref<128x128xf32, #tpu.memory_space<vmem>>, vector<16x128xf32>
    %54 = arith.truncf %49 : vector<16x128xf32> to vector<16x128xbf16>
    %cst_27 = arith.constant dense<0.000000e+00> : vector<16x128xf32>
    %55 = tpu.matmul %54, %8, %cst_27 {dimension_numbers = #tpu.dot_dimension_numbers<[1], [0], [0], [1], [0, 0, 1, 1], [], []>} : vector<16x128xbf16>, vector<128x128xbf16>, vector<16x128xf32> -> vector<16x128xf32>
    %56 = arith.addf %53, %55 : vector<16x128xf32>
    %57 = math.tanh %56 : vector<16x128xf32>
    %c6_i32 = arith.constant 6 : i32
    %c16_i32_28 = arith.constant 16 : i32
    %58 = arith.muli %c6_i32, %c16_i32_28 : i32
    %59 = tpu.assume_multiple %58, 8 : i32
    %60 = arith.index_cast %59 : i32 to index
    %c0_29 = arith.constant 0 : index
    %61 = vector.load %arg8[%60, %c0_29] : memref<128x128xf32, #tpu.memory_space<vmem>>, vector<16x128xf32>
    %62 = arith.truncf %57 : vector<16x128xf32> to vector<16x128xbf16>
    %cst_30 = arith.constant dense<0.000000e+00> : vector<16x128xf32>
    %63 = tpu.matmul %62, %8, %cst_30 {dimension_numbers = #tpu.dot_dimension_numbers<[1], [0], [0], [1], [0, 0, 1, 1], [], []>} : vector<16x128xbf16>, vector<128x128xbf16>, vector<16x128xf32> -> vector<16x128xf32>
    %64 = arith.addf %61, %63 : vector<16x128xf32>
    %65 = math.tanh %64 : vector<16x128xf32>
    %c7_i32 = arith.constant 7 : i32
    %c16_i32_31 = arith.constant 16 : i32
    %66 = arith.muli %c7_i32, %c16_i32_31 : i32
    %67 = tpu.assume_multiple %66, 8 : i32
    %68 = arith.index_cast %67 : i32 to index
    %c0_32 = arith.constant 0 : index
    %69 = vector.load %arg8[%68, %c0_32] : memref<128x128xf32, #tpu.memory_space<vmem>>, vector<16x128xf32>
    %70 = arith.truncf %65 : vector<16x128xf32> to vector<16x128xbf16>
    %cst_33 = arith.constant dense<0.000000e+00> : vector<16x128xf32>
    %71 = tpu.matmul %70, %8, %cst_33 {dimension_numbers = #tpu.dot_dimension_numbers<[1], [0], [0], [1], [0, 0, 1, 1], [], []>} : vector<16x128xbf16>, vector<128x128xbf16>, vector<16x128xf32> -> vector<16x128xf32>
    %72 = arith.addf %69, %71 : vector<16x128xf32>
    %73 = math.tanh %72 : vector<16x128xf32>
    %c8_i32 = arith.constant 8 : i32
    %74 = arith.truncf %73 : vector<16x128xf32> to vector<16x128xbf16>
    %c0_34 = arith.constant 0 : index
    %c0_35 = arith.constant 0 : index
    %75 = vector.load %arg5[%c0_34, %c0_35] : memref<128x128xbf16, #tpu.memory_space<vmem>>, vector<128x128xbf16>
    %cst_36 = arith.constant dense<0.000000e+00> : vector<16x128xf32>
    %76 = tpu.matmul %74, %75, %cst_36 {dimension_numbers = #tpu.dot_dimension_numbers<[1], [0], [0], [1], [0, 0, 1, 1], [], []>} : vector<16x128xbf16>, vector<128x128xbf16>, vector<16x128xf32> -> vector<16x128xf32>
    %c0_37 = arith.constant 0 : index
    %c0_38 = arith.constant 0 : index
    %77 = vector.load %arg6[%c0_37, %c0_38] : memref<1x128xf32, #tpu.memory_space<vmem>>, vector<1x128xf32>
    %78 = vector.broadcast %77 : vector<1x128xf32> to vector<16x128xf32>
    %79 = arith.addf %76, %78 : vector<16x128xf32>
    %c0_39 = arith.constant 0 : index
    %c0_40 = arith.constant 0 : index
    %80 = vector.load %arg7[%c0_39, %c0_40] : memref<16x128xf32, #tpu.memory_space<vmem>>, vector<16x128xf32>
    tpu.vector_store %arg7[%c0_39, %c0_40], %79 {strides = array<i32>} : memref<16x128xf32, #tpu.memory_space<vmem>>, vector<16x128xf32>,
    return
  }
  func.func @transform_0(%arg0: i32) -> (i32, i32, i32) {
    %c0_i32 = arith.constant 0 : i32
    %c0_i32_0 = arith.constant 0 : i32
    %c0_i32_1 = arith.constant 0 : i32
    return %arg0, %c0_i32, %c0_i32_0 : i32, i32, i32
  }
  func.func @transform_1(%arg0: i32) -> (i32, i32) {
    %c0_i32 = arith.constant 0 : i32
    %c0_i32_0 = arith.constant 0 : i32
    %c0_i32_1 = arith.constant 0 : i32
    return %c0_i32, %c0_i32_0 : i32, i32
  }
  func.func @transform_2(%arg0: i32) -> (i32, i32) {
    %c0_i32 = arith.constant 0 : i32
    %c0_i32_0 = arith.constant 0 : i32
    %c0_i32_1 = arith.constant 0 : i32
    return %c0_i32, %c0_i32_0 : i32, i32
  }
  func.func @transform_3(%arg0: i32) -> (i32, i32) {
    %c0_i32 = arith.constant 0 : i32
    %c0_i32_0 = arith.constant 0 : i32
    %c0_i32_1 = arith.constant 0 : i32
    return %c0_i32, %c0_i32_0 : i32, i32
  }
  func.func @transform_4(%arg0: i32) -> (i32, i32) {
    %c0_i32 = arith.constant 0 : i32
    %c0_i32_0 = arith.constant 0 : i32
    %c0_i32_1 = arith.constant 0 : i32
    return %c0_i32, %c0_i32_0 : i32, i32
  }
  func.func @transform_5(%arg0: i32) -> (i32, i32) {
    %c0_i32 = arith.constant 0 : i32
    %c0_i32_0 = arith.constant 0 : i32
    %c0_i32_1 = arith.constant 0 : i32
    return %c0_i32, %c0_i32_0 : i32, i32
  }
  func.func @transform_6(%arg0: i32) -> (i32, i32) {
    %c0_i32 = arith.constant 0 : i32
    %c0_i32_0 = arith.constant 0 : i32
    return %arg0, %c0_i32 : i32, i32
  }
}

</mosaic_0001>

<bundles_post_ra>
// kernel: tpu_custom_call.1
= control target key start
LH: loop header
LB: loop body
LE: loop exit
PB: predicated region body
PF: predicated region fallthrough
CT: control target
= control target key end

     0   :  { %11 = vsyncpa [#allocation4], 0  ;;  %s1628_s0 = inlined_call_operand.vmem [shape: bf16[1,128,16], index: 0, kind: input, shape index: {}]   ;;  %s1629_s1 = inlined_call_operand.vmem [shape: bf16[16,128], index: 1, kind: input, shape index: {}]   ;;  %s1630_s2 = inlined_call_operand.vmem [shape: bf16[128,128], index: 2, kind: input, shape index: {}]   ;;  %s1631_s3 = inlined_call_operand.vmem [shape: f32[1,128], index: 3, kind: input, shape index: {}]   ;;  %s1632_s4 = inlined_call_operand.hbm [shape: bf16[128,128], index: 4, kind: input, shape index: {}]   ;;  %s1633_s5 = inlined_call_operand.vmem [shape: f32[1,128], index: 5, kind: input, shape index: {}]   ;;  %s1634_s6 = inlined_call_operand.hbm [shape: f32[16,128], index: 6, kind: output, shape index: {}]  }
   0x1   :  { %12 = vsyncpa [#allocation5], 0  ;;  %s1271_s21 = smov [#allocation3]   ;;  %s1223_s25 = scalar_lea.hbm %s1632_s4, 1024 }
   0x2   :  { %s26_s22 = sshll.u32 %s1271_s21, 4  ;;  %p1224_p0 = scmp.ne.s32.totalorder %s1632_s4, %s1223_s25  ;;  %s27_s22 = int_to_ptr.vmem [resolvable:$true] %s26_s22 }
   0x3   :  { %p1227_p1 = scmp.lt.u32.totalorder %s1223_s25, %s1632_s4 }
   0x5   :  { %p1229_p2 = pnand %p1227_p1, %p1224_p0 }
   0x7   :  { %1232 = shalt.err (!%p1229_p2)
}
   0x8   :  { %s1233_s30 = scalar_lea.vmem %s27_s22, 1024  ;;  %p1238_p4 = scmp.lt.s32.totalorder %s27_s22, %s27_s22 }
   0x9   :  { %p1234_p3 = scmp.ne.s32.totalorder %s27_s22, %s1233_s30  ;;  %p1239_p5 = scmp.lt.s32.totalorder %s1233_s30, %s1233_s30 }
   0xb   :  { %p1240_p6 = por %p1239_p5, %p1238_p4 }
   0xd   :  { %p1241_p7 = pnand %p1240_p6, %p1234_p3 }
   0xf   :  { %1244 = shalt.err (!%p1241_p7)
}
  0x10   :  { %s1272_s7 = smov 64   ;;  %s1273_s8 = smov 4  }
  0x11   :  { %32 = dma.hbm_to_vmem [thread:$0]  %s1632_s4, 1024, %s27_s22, [#allocation4], %s1272_s7, %s1272_s7, %s1273_s8  }
  0x12   :  { %1267 = dma.done.wait [#allocation4], 1024  }
  0x13   :  { %1268 = vsyncadd [#allocation4], 4294966272  ;;  %v1274_v0 = vmov 0.0   ;;  %vm1275_vm0 = vmmov 0   ;;  %v1333_v1 = vld [vmem:[%s1630_s2] sm:$0xff]   ;;  %v1339_v2 = vld [vmem:[%s1630_s2 + $0x8] sm:$0xff]  }
  0x14   :  { %977 = vmatprep.subr.bf16.mxu1 %v1274_v0  ;;  %993 = vmatprep.mubr.msk.bf16.mxu1 %vm1275_vm0, %v1274_v0  ;;  %v1345_v3 = vld [vmem:[%s1630_s2 + $0x10] sm:$0xff]   ;;  %v1172_v4 = vld [vmem:[%s1629_s1] sm:$0xff]   ;;  %vm110_vm1 = vcmask 130048   ;;  %v1175_v6 = vld [vmem:[%s1628_s0 + $0x8] sm:$0xff]   ;;  %v1276_v14 = vmov 0   ;;  %s1277_s19 = smov [#allocation6]  }
  0x15   :  { %978 = vmatpush3.bf16.msra.mxu1 %v1333_v1  ;;  %v1173_v5 = vld [vmem:[%s1628_s0] sm:$0xff]   ;;  %959 = vmatprep.subr.bf16.mxu0 %v1172_v4  ;;  %v1363_v7 = vld [vmem:[%s1630_s2 + $0x18] sm:$0xff]   ;;  %v1177_v8 = vld [vmem:[%s1628_s0 + $0x10] sm:$0xff]   ;;  %s822_s20 = sshll.u32 %s1277_s19, 4  ;;  %s823_s20 = int_to_ptr.vmem [resolvable:$true] %s822_s20 }
  0x16   :  { %979 = vmatprep.subr.bf16.mxu1 %v1274_v0  ;;  %960 = vmatpush3.bf16.msra.mxu0 %v1172_v4  ;;  %v1373_v9 = vld [vmem:[%s1630_s2 + $0x20] sm:$0xff]   ;;  %v1178_v10 = vld [vmem:[%s1628_s0 + $0x18] sm:$0xff]   ;;  %v1387_v11 = vld [vmem:[%s1630_s2 + $0x28] sm:$0xff]   ;;  %s1245_s21 = scalar_lea.vmem %s823_s20, 256  ;;  %p1250_p9 = scmp.lt.s32.totalorder %s823_s20, %s823_s20 }
  0x17   :  { %961 = vmatprep.mubr.msk.bf16.mxu0 %vm110_vm1, %v1173_v5  ;;  %997 = vmatprep.subr.bf16.mxu0 %v1274_v0  ;;  %v1399_v12 = vld [vmem:[%s1630_s2 + $0x30] sm:$0xff]   ;;  %v1408_v13 = vld [vmem:[%s1630_s2 + $0x38] sm:$0xff]   ;;  %v1179_v15 = vld [vmem:[%s1628_s0 + $0x20] sm:$0xff]   ;;  %p1246_p8 = scmp.ne.s32.totalorder %s823_s20, %s1245_s21  ;;  %p1251_p10 = scmp.lt.s32.totalorder %s1245_s21, %s1245_s21 }
  0x18   :  { %v1180_v16 = vld [vmem:[%s1628_s0 + $0x28] sm:$0xff]   ;;  %v1181_v17 = vld [vmem:[%s1628_s0 + $0x30] sm:$0xff]   ;;  %v1182_v18 = vld [vmem:[%s1628_s0 + $0x38] sm:$0xff]  }
  0x19   :  { %980 = vmatpush3.bf16.msra.mxu1 %v1339_v2  ;;  %962 = vmatmul.mubr.msk.bf16.vlgmr.msra.gmra.mrb[0].mxu0 %vm110_vm1, %v1175_v6  ;;  %v1469_v27 = vld [vmem:[%s1631_s3] ss:$0 sm:$0xff]  ;;  %p1252_p11 = por %p1251_p10, %p1250_p9 }
  0x1a   :  { %981 = vmatprep.subr.bf16.mxu1 %v1274_v0  ;;  %998 = vmatpush3.bf16.msra.mxu0 %v1333_v1 }
  0x1b   :  { %965 = vmatprep.mubr.msk.bf16.mxu0 %vm110_vm1, %v1177_v8  ;;  %999 = vmatprep.subr.bf16.mxu0 %v1274_v0  ;;  %p1253_p12 = pnand %p1252_p11, %p1246_p8 }
  0x1d   :  { %982 = vmatpush3.bf16.msra.mxu1 %v1345_v3 }
  0x1e   :  { %983 = vmatprep.subr.bf16.mxu1 %v1274_v0  ;;  %1000 = vmatpush3.bf16.msra.mxu0 %v1339_v2 }
  0x1f   :  { %1001 = vmatprep.subr.bf16.mxu0 %v1274_v0 }
  0x21   :  { %984 = vmatpush3.bf16.msra.mxu1 %v1363_v7  ;;  %966 = vmatmul.mubr.msk.bf16.gmra.mrb[4].mxu0 %vm110_vm1, %v1178_v10 }
  0x22   :  { %985 = vmatprep.subr.bf16.mxu1 %v1274_v0  ;;  %1002 = vmatpush3.bf16.msra.mxu0 %v1345_v3 }
  0x23   :  { %1003 = vmatprep.subr.bf16.mxu0 %v1274_v0  ;;  %969 = vmatprep.mubr.msk.bf16.mxu0 %vm110_vm1, %v1179_v15 }
  0x25   :  { %986 = vmatpush3.bf16.msra.mxu1 %v1373_v9 }
  0x26   :  { %987 = vmatprep.subr.bf16.mxu1 %v1274_v0  ;;  %1004 = vmatpush3.bf16.msra.mxu0 %v1363_v7 }
  0x27   :  { %1005 = vmatprep.subr.bf16.mxu0 %v1274_v0 }
  0x29   :  { %988 = vmatpush3.bf16.msra.mxu1 %v1387_v11  ;;  %970 = vmatmul.mubr.msk.bf16.gmra.mrb[8].mxu0 %vm110_vm1, %v1180_v16 }
  0x2a   :  { %989 = vmatprep.subr.bf16.mxu1 %v1274_v0  ;;  %1006 = vmatpush3.bf16.msra.mxu0 %v1373_v9 }
  0x2b   :  { %1007 = vmatprep.subr.bf16.mxu0 %v1274_v0  ;;  %973 = vmatprep.mubr.msk.bf16.mxu0 %vm110_vm1, %v1181_v17 }
  0x2d   :  { %990 = vmatpush3.bf16.msra.mxu1 %v1399_v12 }
  0x2e   :  { %991 = vmatprep.subr.bf16.mxu1 %v1274_v0  ;;  %1008 = vmatpush3.bf16.msra.mxu0 %v1387_v11 }
  0x2f   :  { %1009 = vmatprep.subr.bf16.mxu0 %v1274_v0 }
  0x31   :  { %992 = vmatpush3.bf16.msra.mxu1 %v1408_v13  ;;  %974 = vmatmul.mubr.msk.bf16.gmra.mrb[12].mxu0 %vm110_vm1, %v1182_v18 }
  0x32   :  { %1017 = vmatprep.subr.bf16.mxu1 %v1274_v0  ;;  %1010 = vmatpush3.bf16.msra.mxu0 %v1399_v12 }
  0x33   :  { %1011 = vmatprep.subr.bf16.mxu0 %v1274_v0  ;;  %1013 = vmatprep.mubr.msk.bf16.mxu0 %vm1275_vm0, %v1274_v0 }
  0x34   :  { %994 = vmatmul.mubr.bf16.vlgmr.msra.gmra.mrb[0].mxu1 %v1276_v14 }
  0x35   :  { %1018 = vmatpush3.bf16.msra.mxu1 %v1333_v1  ;;  %1033 = vmatprep.mubr.msk.bf16.mxu1 %vm1275_vm0, %v1274_v0 }
  0x36   :  { %1019 = vmatprep.subr.bf16.mxu1 %v1274_v0  ;;  %1012 = vmatpush3.bf16.msra.mxu0 %v1408_v13 }
  0x37   :  { %1037 = vmatprep.subr.bf16.mxu0 %v1274_v0 }
  0x39   :  { %1020 = vmatpush3.bf16.msra.mxu1 %v1339_v2 }
  0x3a   :  { %1021 = vmatprep.subr.bf16.mxu1 %v1274_v0 }
  0x3d   :  { %1022 = vmatpush3.bf16.msra.mxu1 %v1345_v3 }
  0x3e   :  { %1023 = vmatprep.subr.bf16.mxu1 %v1274_v0 }
  0x41   :  { %1024 = vmatpush3.bf16.msra.mxu1 %v1363_v7 }
  0x42   :  { %1025 = vmatprep.subr.bf16.mxu1 %v1274_v0 }
  0x45   :  { %1026 = vmatpush3.bf16.msra.mxu1 %v1373_v9 }
  0x46   :  { %1027 = vmatprep.subr.bf16.mxu1 %v1274_v0 }
  0x49   :  { %1028 = vmatpush3.bf16.msra.mxu1 %v1387_v11 }
  0x4a   :  { %1029 = vmatprep.subr.bf16.mxu1 %v1274_v0 }
  0x4d   :  { %1030 = vmatpush3.bf16.msra.mxu1 %v1399_v12 }
  0x4e   :  { %1031 = vmatprep.subr.bf16.mxu1 %v1274_v0 }
  0x51   :  { %1032 = vmatpush3.bf16.msra.mxu1 %v1408_v13 }
  0x52   :  { %1057 = vmatprep.subr.bf16.mxu1 %v1274_v0 }
  0xec   :  { %v963_v19 = vpop.f32.mrb[0].mxu0 }
  0xed   :  { %v169_v20 = vpop.f32.mrb[1].mxu0  ;;  %v178_v47 = vadd.f32 %v963_v19, %v1469_v27 }
  0xee   :  { %v964_v21 = vpop.f32.mrb[2].mxu0  ;;  %v170_v28 = vadd.f32 %v1469_v27, %v169_v20 }
  0xef   :  { %v172_v22 = vpop.f32.mrb[3].mxu0  ;;  %v181_v49 = vadd.f32 %v964_v21, %v1469_v27 }
  0xf0   :  { %v173_v30 = vadd.f32 %v1469_v27, %v172_v22 }
  0xf4   :  { %v1458_v23 = vpop.f32.mrb[4].mxu0 }
  0xf5   :  { %v1460_v24 = vpop.f32.mrb[5].mxu0  ;;  %v194_v14 = vadd.f32 %v1458_v23, %v1469_v27 }
  0xf6   :  { %v1462_v25 = vpop.f32.mrb[6].mxu0  ;;  %v186_v58 = vadd.f32 %v1469_v27, %v1460_v24 }
  0xf7   :  { %v1464_v26 = vpop.f32.mrb[7].mxu0  ;;  %v197_v16 = vadd.f32 %v1462_v25, %v1469_v27 }
  0xf8   :  { %v189_v60 = vadd.f32 %v1469_v27, %v1464_v26 }
  0xfc   :  { %v1491_v39 = vpop.f32.mrb[8].mxu0 }
  0xfd   :  { %v1493_v40 = vpop.f32.mrb[9].mxu0 }
  0xfe   :  { %v1495_v41 = vpop.f32.mrb[10].mxu0  ;;  %v202_v23 = vadd.f32 %v1469_v27, %v1493_v40 }
  0xff   :  { %v1497_v42 = vpop.f32.mrb[11].mxu0 }
 0x104   :  { %v1499_v43 = vpop.f32.mrb[12].mxu0 }
 0x105   :  { %v1501_v44 = vpop.f32.mrb[13].mxu0 }
 0x106   :  { %v1503_v45 = vpop.f32.mrb[14].mxu0 }
 0x107   :  { %v348_v29 = vpop.f32.mrb[0].mxu1  ;;  %v1505_v46 = vpop.f32.mrb[15].mxu0 }
 0x108   :  { %v355_v31 = vadd.f32 %v348_v29, %v170_v28  ;;  %v995_v32 = vpop.f32.mrb[1].mxu1  ;;  %v205_v28 = vadd.f32 %v1469_v27, %v1497_v42 }
 0x109   :  { %v351_v33 = vpop.f32.mrb[2].mxu1 }
 0x10a   :  { %v356_v34 = vadd.f32 %v351_v33, %v173_v30  ;;  %v996_v35 = vpop.f32.mrb[3].mxu1  ;;  %1191 = vtanh.f32 %v355_v31 }
 0x10c   :  { %1193 = vtanh.f32 %v356_v34 }
 0x114   :  { %v1192_v36 = vpop.eup %1191 }
 0x116   :  { %v1194_v37 = vpop.eup %1193 }
 0x117   :  { %v362_v38 = vpack.c.bf16 %v1194_v37, %v1192_v36 }
 0x119   :  { %1014 = vmatmul.mubr.bf16.vlgmr.msra.gmra.mrb[16].mxu0 %v362_v38 }
 0x11a   :  { %1038 = vmatpush3.bf16.msra.mxu0 %v1333_v1  ;;  %1053 = vmatprep.mubr.msk.bf16.mxu0 %vm1275_vm0, %v1274_v0 }
 0x11b   :  { %1039 = vmatprep.subr.bf16.mxu0 %v1274_v0 }
 0x11e   :  { %1040 = vmatpush3.bf16.msra.mxu0 %v1339_v2 }
 0x11f   :  { %1041 = vmatprep.subr.bf16.mxu0 %v1274_v0 }
 0x122   :  { %1042 = vmatpush3.bf16.msra.mxu0 %v1345_v3 }
 0x123   :  { %1043 = vmatprep.subr.bf16.mxu0 %v1274_v0 }
 0x126   :  { %1044 = vmatpush3.bf16.msra.mxu0 %v1363_v7 }
 0x127   :  { %1045 = vmatprep.subr.bf16.mxu0 %v1274_v0 }
 0x12a   :  { %1046 = vmatpush3.bf16.msra.mxu0 %v1373_v9 }
 0x12b   :  { %1047 = vmatprep.subr.bf16.mxu0 %v1274_v0 }
 0x12e   :  { %1048 = vmatpush3.bf16.msra.mxu0 %v1387_v11 }
 0x12f   :  { %1049 = vmatprep.subr.bf16.mxu0 %v1274_v0 }
 0x132   :  { %1050 = vmatpush3.bf16.msra.mxu0 %v1399_v12 }
 0x133   :  { %1051 = vmatprep.subr.bf16.mxu0 %v1274_v0 }
 0x136   :  { %1052 = vmatpush3.bf16.msra.mxu0 %v1408_v13 }
 0x137   :  { %1077 = vmatprep.subr.bf16.mxu0 %v1274_v0 }
 0x1ec   :  { %v397_v48 = vpop.f32.mrb[16].mxu0 }
 0x1ed   :  { %v404_v50 = vadd.f32 %v397_v48, %v178_v47  ;;  %v1015_v51 = vpop.f32.mrb[17].mxu0  ;;  %v1186_v47 = vld [vmem:[#allocation3 + $0x18] sm:$0xff]   ;;  %v218_v48 = vadd.f32 %v1469_v27, %v1501_v44  ;;  %v1188_v44 = vld [vmem:[#allocation3 + $0x28] sm:$0xff]  }
 0x1ee   :  { %v400_v52 = vpop.f32.mrb[18].mxu0 }
 0x1ef   :  { %v405_v53 = vadd.f32 %v400_v52, %v181_v49  ;;  %v1016_v54 = vpop.f32.mrb[19].mxu0  ;;  %1195 = vtanh.f32 %v404_v50  ;;  %v221_v50 = vadd.f32 %v1469_v27, %v1505_v46  ;;  %v1190_v46 = vld [vmem:[#allocation3 + $0x38] sm:$0xff]  }
 0x1f1   :  { %1197 = vtanh.f32 %v405_v53 }
 0x1f9   :  { %v1196_v55 = vpop.eup %1195 }
 0x1fb   :  { %v1198_v56 = vpop.eup %1197 }
 0x1fc   :  { %v411_v57 = vpack.c.bf16 %v1198_v56, %v1196_v55 }
 0x1fe   :  { %1034 = vmatmul.mubr.bf16.vlgmr.msra.gmra.mrb[4].mxu1 %v411_v57 }
 0x1ff   :  { %1058 = vmatpush3.bf16.msra.mxu1 %v1333_v1  ;;  %1073 = vmatprep.mubr.msk.bf16.mxu1 %vm1275_vm0, %v1274_v0 }
 0x200   :  { %1059 = vmatprep.subr.bf16.mxu1 %v1274_v0 }
 0x203   :  { %1060 = vmatpush3.bf16.msra.mxu1 %v1339_v2 }
 0x204   :  { %1061 = vmatprep.subr.bf16.mxu1 %v1274_v0 }
 0x207   :  { %1062 = vmatpush3.bf16.msra.mxu1 %v1345_v3 }
 0x208   :  { %1063 = vmatprep.subr.bf16.mxu1 %v1274_v0 }
 0x20b   :  { %1064 = vmatpush3.bf16.msra.mxu1 %v1363_v7 }
 0x20c   :  { %1065 = vmatprep.subr.bf16.mxu1 %v1274_v0 }
 0x20f   :  { %1066 = vmatpush3.bf16.msra.mxu1 %v1373_v9 }
 0x210   :  { %1067 = vmatprep.subr.bf16.mxu1 %v1274_v0 }
 0x213   :  { %1068 = vmatpush3.bf16.msra.mxu1 %v1387_v11 }
 0x214   :  { %1069 = vmatprep.subr.bf16.mxu1 %v1274_v0 }
 0x217   :  { %1070 = vmatpush3.bf16.msra.mxu1 %v1399_v12 }
 0x218   :  { %1071 = vmatprep.subr.bf16.mxu1 %v1274_v0 }
 0x21b   :  { %1072 = vmatpush3.bf16.msra.mxu1 %v1408_v13 }
 0x21c   :  { %1097 = vmatprep.subr.bf16.mxu1 %v1274_v0 }
 0x2d1   :  { %v446_v59 = vpop.f32.mrb[4].mxu1 }
 0x2d2   :  { %v453_v61 = vadd.f32 %v446_v59, %v186_v58  ;;  %v1035_v62 = vpop.f32.mrb[5].mxu1  ;;  %v1187_v59 = vld [vmem:[#allocation3 + $0x20] sm:$0xff]  }
 0x2d3   :  { %v449_v63 = vpop.f32.mrb[6].mxu1 }
 0x2d4   :  { %v454_v4 = vadd.f32 %v449_v63, %v189_v60  ;;  %v1036_v5 = vpop.f32.mrb[7].mxu1  ;;  %1199 = vtanh.f32 %v453_v61  ;;  %v1189_v60 = vld [vmem:[#allocation3 + $0x30] sm:$0xff]   ;;  %v226_v61 = vadd.f32 %v1499_v43, %v1469_v27  ;;  %v229_v63 = vadd.f32 %v1503_v45, %v1469_v27 }
 0x2d6   :  { %1201 = vtanh.f32 %v454_v4 }
 0x2de   :  { %v1200_v6 = vpop.eup %1199 }
 0x2e0   :  { %v1202_v8 = vpop.eup %1201 }
 0x2e1   :  { %v460_v10 = vpack.c.bf16 %v1202_v8, %v1200_v6 }
 0x2e3   :  { %1054 = vmatmul.mubr.bf16.vlgmr.msra.gmra.mrb[20].mxu0 %v460_v10 }
 0x2e4   :  { %1078 = vmatpush3.bf16.msra.mxu0 %v1333_v1  ;;  %1093 = vmatprep.mubr.msk.bf16.mxu0 %vm1275_vm0, %v1274_v0 }
 0x2e5   :  { %1079 = vmatprep.subr.bf16.mxu0 %v1274_v0 }
 0x2e8   :  { %1080 = vmatpush3.bf16.msra.mxu0 %v1339_v2 }
 0x2e9   :  { %1081 = vmatprep.subr.bf16.mxu0 %v1274_v0 }
 0x2ec   :  { %1082 = vmatpush3.bf16.msra.mxu0 %v1345_v3 }
 0x2ed   :  { %1083 = vmatprep.subr.bf16.mxu0 %v1274_v0 }
 0x2f0   :  { %1084 = vmatpush3.bf16.msra.mxu0 %v1363_v7 }
 0x2f1   :  { %1085 = vmatprep.subr.bf16.mxu0 %v1274_v0 }
 0x2f4   :  { %1086 = vmatpush3.bf16.msra.mxu0 %v1373_v9 }
 0x2f5   :  { %1087 = vmatprep.subr.bf16.mxu0 %v1274_v0 }
 0x2f8   :  { %1088 = vmatpush3.bf16.msra.mxu0 %v1387_v11 }
 0x2f9   :  { %1089 = vmatprep.subr.bf16.mxu0 %v1274_v0 }
 0x2fc   :  { %1090 = vmatpush3.bf16.msra.mxu0 %v1399_v12 }
 0x2fd   :  { %1091 = vmatprep.subr.bf16.mxu0 %v1274_v0 }
 0x300   :  { %1092 = vmatpush3.bf16.msra.mxu0 %v1408_v13 }
 0x301   :  { %1117 = vmatprep.subr.bf16.mxu0 %v1274_v0 }
 0x3b6   :  { %v495_v15 = vpop.f32.mrb[20].mxu0 }
 0x3b7   :  { %v502_v17 = vadd.f32 %v495_v15, %v194_v14  ;;  %v1055_v18 = vpop.f32.mrb[21].mxu0 }
 0x3b8   :  { %v498_v19 = vpop.f32.mrb[22].mxu0 }
 0x3b9   :  { %v503_v20 = vadd.f32 %v498_v19, %v197_v16  ;;  %v1056_v21 = vpop.f32.mrb[23].mxu0  ;;  %1203 = vtanh.f32 %v502_v17 }
 0x3bb   :  { %1205 = vtanh.f32 %v503_v20 }
 0x3c3   :  { %v1204_v22 = vpop.eup %1203 }
 0x3c5   :  { %v1206_v24 = vpop.eup %1205 }
 0x3c6   :  { %v509_v26 = vpack.c.bf16 %v1206_v24, %v1204_v22 }
 0x3c8   :  { %1074 = vmatmul.mubr.bf16.vlgmr.msra.gmra.mrb[8].mxu1 %v509_v26 }
 0x3c9   :  { %1098 = vmatpush3.bf16.msra.mxu1 %v1333_v1  ;;  %1113 = vmatprep.mubr.msk.bf16.mxu1 %vm1275_vm0, %v1274_v0 }
 0x3ca   :  { %1099 = vmatprep.subr.bf16.mxu1 %v1274_v0 }
 0x3cd   :  { %1100 = vmatpush3.bf16.msra.mxu1 %v1339_v2 }
 0x3ce   :  { %1101 = vmatprep.subr.bf16.mxu1 %v1274_v0 }
 0x3d1   :  { %1102 = vmatpush3.bf16.msra.mxu1 %v1345_v3 }
 0x3d2   :  { %1103 = vmatprep.subr.bf16.mxu1 %v1274_v0 }
 0x3d5   :  { %1104 = vmatpush3.bf16.msra.mxu1 %v1363_v7 }
 0x3d6   :  { %1105 = vmatprep.subr.bf16.mxu1 %v1274_v0 }
 0x3d9   :  { %1106 = vmatpush3.bf16.msra.mxu1 %v1373_v9 }
 0x3da   :  { %1107 = vmatprep.subr.bf16.mxu1 %v1274_v0 }
 0x3dd   :  { %1108 = vmatpush3.bf16.msra.mxu1 %v1387_v11 }
 0x3de   :  { %1109 = vmatprep.subr.bf16.mxu1 %v1274_v0 }
 0x3e1   :  { %1110 = vmatpush3.bf16.msra.mxu1 %v1399_v12 }
 0x3e2   :  { %1111 = vmatprep.subr.bf16.mxu1 %v1274_v0 }
 0x3e5   :  { %1112 = vmatpush3.bf16.msra.mxu1 %v1408_v13 }
 0x3e6   :  { %1137 = vmatprep.subr.bf16.mxu1 %v1274_v0 }
 0x49b   :  { %v544_v25 = vpop.f32.mrb[8].mxu1 }
 0x49c   :  { %v551_v29 = vadd.f32 %v544_v25, %v202_v23  ;;  %v1075_v30 = vpop.f32.mrb[9].mxu1 }
 0x49d   :  { %v547_v31 = vpop.f32.mrb[10].mxu1 }
 0x49e   :  { %v552_v32 = vadd.f32 %v547_v31, %v205_v28  ;;  %v1076_v33 = vpop.f32.mrb[11].mxu1  ;;  %1207 = vtanh.f32 %v551_v29 }
 0x4a0   :  { %1209 = vtanh.f32 %v552_v32 }
 0x4a8   :  { %v1208_v34 = vpop.eup %1207 }
 0x4aa   :  { %v1210_v35 = vpop.eup %1209 }
 0x4ab   :  { %v558_v36 = vpack.c.bf16 %v1210_v35, %v1208_v34 }
 0x4ad   :  { %1094 = vmatmul.mubr.bf16.vlgmr.msra.gmra.mrb[24].mxu0 %v558_v36 }
 0x4ae   :  { %1118 = vmatpush3.bf16.msra.mxu0 %v1333_v1  ;;  %1133 = vmatprep.mubr.msk.bf16.mxu0 %vm1275_vm0, %v1274_v0  ;;  %v210_v1 = vadd.f32 %v1491_v39, %v1469_v27  ;;  %v1184_v39 = vld [vmem:[#allocation3 + $0x8] sm:$0xff]  }
 0x4af   :  { %1119 = vmatprep.subr.bf16.mxu0 %v1274_v0 }
 0x4b2   :  { %1120 = vmatpush3.bf16.msra.mxu0 %v1339_v2 }
 0x4b3   :  { %1121 = vmatprep.subr.bf16.mxu0 %v1274_v0 }
 0x4b6   :  { %1122 = vmatpush3.bf16.msra.mxu0 %v1345_v3  ;;  %v213_v3 = vadd.f32 %v1495_v41, %v1469_v27  ;;  %v1185_v41 = vld [vmem:[#allocation3 + $0x10] sm:$0xff]  }
 0x4b7   :  { %1123 = vmatprep.subr.bf16.mxu0 %v1274_v0 }
 0x4ba   :  { %1124 = vmatpush3.bf16.msra.mxu0 %v1363_v7 }
 0x4bb   :  { %1125 = vmatprep.subr.bf16.mxu0 %v1274_v0 }
 0x4be   :  { %1126 = vmatpush3.bf16.msra.mxu0 %v1373_v9 }
 0x4bf   :  { %1127 = vmatprep.subr.bf16.mxu0 %v1274_v0 }
 0x4c2   :  { %1128 = vmatpush3.bf16.msra.mxu0 %v1387_v11 }
 0x4c3   :  { %1129 = vmatprep.subr.bf16.mxu0 %v1274_v0 }
 0x4c6   :  { %1130 = vmatpush3.bf16.msra.mxu0 %v1399_v12 }
 0x4c7   :  { %1131 = vmatprep.subr.bf16.mxu0 %v1274_v0 }
 0x4ca   :  { %1132 = vmatpush3.bf16.msra.mxu0 %v1408_v13  ;;  %v1183_v13 = vld [vmem:[#allocation3] sm:$0xff]  }
 0x580   :  { %v593_v2 = vpop.f32.mrb[24].mxu0 }
 0x581   :  { %v600_v7 = vadd.f32 %v593_v2, %v210_v1  ;;  %v1095_v9 = vpop.f32.mrb[25].mxu0 }
 0x582   :  { %v596_v37 = vpop.f32.mrb[26].mxu0 }
 0x583   :  { %v601_v38 = vadd.f32 %v596_v37, %v213_v3  ;;  %v1096_v11 = vpop.f32.mrb[27].mxu0  ;;  %1211 = vtanh.f32 %v600_v7 }
 0x585   :  { %1213 = vtanh.f32 %v601_v38 }
 0x58d   :  { %v1212_v40 = vpop.eup %1211 }
 0x58f   :  { %v1214_v12 = vpop.eup %1213 }
 0x590   :  { %v607_v42 = vpack.c.bf16 %v1214_v12, %v1212_v40 }
 0x592   :  { %1114 = vmatmul.mubr.bf16.vlgmr.msra.gmra.mrb[12].mxu1 %v607_v42 }
 0x593   :  { %1153 = vmatprep.mubr.msk.bf16.mxu1 %vm1275_vm0, %v1274_v0  ;;  %1138 = vmatpush3.bf16.msra.mxu1 %v1183_v13 }
 0x594   :  { %1139 = vmatprep.subr.bf16.mxu1 %v1274_v0 }
 0x597   :  { %1140 = vmatpush3.bf16.msra.mxu1 %v1184_v39 }
 0x598   :  { %1141 = vmatprep.subr.bf16.mxu1 %v1274_v0 }
 0x59b   :  { %1142 = vmatpush3.bf16.msra.mxu1 %v1185_v41 }
 0x59c   :  { %1143 = vmatprep.subr.bf16.mxu1 %v1274_v0 }
 0x59f   :  { %1144 = vmatpush3.bf16.msra.mxu1 %v1186_v47 }
 0x5a0   :  { %1145 = vmatprep.subr.bf16.mxu1 %v1274_v0 }
 0x5a3   :  { %1146 = vmatpush3.bf16.msra.mxu1 %v1187_v59 }
 0x5a4   :  { %1147 = vmatprep.subr.bf16.mxu1 %v1274_v0 }
 0x5a7   :  { %1148 = vmatpush3.bf16.msra.mxu1 %v1188_v44 }
 0x5a8   :  { %1149 = vmatprep.subr.bf16.mxu1 %v1274_v0 }
 0x5ab   :  { %1150 = vmatpush3.bf16.msra.mxu1 %v1189_v60 }
 0x5ac   :  { %1151 = vmatprep.subr.bf16.mxu1 %v1274_v0  ;;  %v860_v0 = vld [vmem:[%s1633_s5] ss:$0 sm:$0xff] }
 0x5af   :  { %1152 = vmatpush3.bf16.msra.mxu1 %v1190_v46 }
 0x665   :  { %v642_v49 = vpop.f32.mrb[12].mxu1 }
 0x666   :  { %v649_v51 = vadd.f32 %v642_v49, %v218_v48  ;;  %v1115_v52 = vpop.f32.mrb[13].mxu1 }
 0x667   :  { %v645_v53 = vpop.f32.mrb[14].mxu1 }
 0x668   :  { %v650_v54 = vadd.f32 %v645_v53, %v221_v50  ;;  %v1116_v55 = vpop.f32.mrb[15].mxu1  ;;  %1215 = vtanh.f32 %v649_v51 }
 0x66a   :  { %1217 = vtanh.f32 %v650_v54 }
 0x672   :  { %v1216_v56 = vpop.eup %1215 }
 0x674   :  { %v1218_v57 = vpop.eup %1217 }
 0x675   :  { %v656_v58 = vpack.c.bf16 %v1218_v57, %v1216_v56 }
 0x677   :  { %1134 = vmatmul.mubr.bf16.vlgmr.msra.gmra.mrb[28].mxu0 %v656_v58 }
 0x74a   :  { %v691_v62 = vpop.f32.mrb[28].mxu0 }
 0x74b   :  { %v698_v4 = vadd.f32 %v691_v62, %v226_v61  ;;  %v1135_v5 = vpop.f32.mrb[29].mxu0 }
 0x74c   :  { %v694_v6 = vpop.f32.mrb[30].mxu0 }
 0x74d   :  { %v699_v8 = vadd.f32 %v694_v6, %v229_v63  ;;  %v1136_v10 = vpop.f32.mrb[31].mxu0  ;;  %1219 = vtanh.f32 %v698_v4 }
 0x74f   :  { %1221 = vtanh.f32 %v699_v8 }
 0x757   :  { %v1220_v14 = vpop.eup %1219 }
 0x759   :  { %v1222_v15 = vpop.eup %1221 }
 0x75a   :  { %v702_v16 = vpack.c.bf16 %v1222_v15, %v1220_v14 }
 0x75c   :  { %1154 = vmatmul.mubr.bf16.vlgmr.msra.gmra.mrb[16].mxu1 %v702_v16 }
 0x82f   :  { %v808_v43 = vpop.f32.mrb[16].mxu1 }
 0x830   :  { %v809_v17 = vadd.f32 %v860_v0, %v808_v43  ;;  %v1155_v27 = vpop.f32.mrb[17].mxu1 }
 0x831   :  { %v811_v45 = vpop.f32.mrb[18].mxu1 }
 0x832   :  { %815 = vst [vmem:[#allocation6] sm:$0xff] %v809_v17  ;;  %v812_v18 = vadd.f32 %v860_v0, %v811_v45  ;;  %v1156_v19 = vpop.f32.mrb[19].mxu1 }
 0x834   :  { %816 = vst [vmem:[#allocation6 + $0x8] sm:$0xff] %v812_v18 }
 0x835   :  { %1256 = shalt.err (!%p1253_p12)
}
 0x836   :  { %s1257_s23 = scalar_lea.hbm %s1634_s6, 256 }
 0x837   :  { %p1258_p13 = scmp.ne.s32.totalorder %s1634_s6, %s1257_s23  ;;  %p1261_p0 = scmp.lt.u32.totalorder %s1257_s23, %s1634_s6 }
 0x839   :  { %p1263_p1 = pnand %p1261_p0, %p1258_p13 }
 0x83b   :  { %1266 = shalt.err (!%p1263_p1)
}
 0x83c   :  { %s1278_s27 = smov 128   ;;  %s1279_s28 = smov 8  }
 0x83d   :  { %828 = dma.vmem_to_hbm [thread:$0]  %s823_s20, 256, %s1634_s6, [#allocation5], %s1278_s27, %s1278_s27, %s1279_s28  }
 0x83e   :  { %1269 = dma.done.wait [#allocation5], 256  }
 0x83f   :  { %1270 = vsyncadd [#allocation5], 4294967040 }
 0x840   :  { %832 = vsyncpa [#allocation4], 1 }
 0x841   :  { %833 = vsyncpa [#allocation5], 1 }

</bundles_post_ra>
